<compile_context>
chip_gen: v7x
topology: tpu7x:2x2x1
jax: 0.10.0
libtpu: 0.0.40
codegen_flags: <defaults>
</compile_context>

<pallas_src>
import jax
import jax.numpy as jnp
from jax.experimental import pallas as pl
from jax.experimental.pallas import tpu as pltpu


def _round_up(x: int, m: int) -> int:
    return ((x + m - 1) // m) * m


def _patch_embed_kernel(x_ref, w_ref, b_ref, o_ref):
    # x_ref: (TM, K)  bf16 patches tile (streams over the M grid axis)
    # w_ref: (K,  E)  bf16 projection   (resident: constant block index)
    # b_ref: (1,  E)  f32  bias         (resident: constant block index)
    # o_ref: (TM, E)  output tile
    acc = jnp.dot(x_ref[...], w_ref[...], preferred_element_type=jnp.float32)
    o_ref[...] = (acc + b_ref[...]).astype(o_ref.dtype)


def patch_embed_forward(x_nchw, weight, bias, patch_size, *,
                        compute_dtype=jnp.bfloat16,
                        out_dtype=None,
                        channels_last=False):
    """PatchEmbed forward.

    x_nchw: (B, C, H, W); weight: (E, C, P, P); bias: (E,).
    Returns (B, E, H//P, W//P) (PyTorch nn.Conv2d(k=P, stride=P) semantics),
    or (B, H//P, W//P, E) when channels_last=True (skips the output
    transpose for token-stream consumers).
    """
    B, C, H, W = x_nchw.shape
    E = weight.shape[0]
    P = patch_size
    assert H % P == 0 and W % P == 0, (
        f"H={H}, W={W} must be divisible by patch_size={P}")
    Hp, Wp = H // P, W // P
    M = B * Hp * Wp
    K = C * P * P
    out_dtype = x_nchw.dtype if out_dtype is None else out_dtype

    # --- im2col: one fused XLA pass (transpose + bf16 convert) -------------
    # (B, C, Hp, P, Wp, P) -> (B, Hp, Wp, C, P, P) -> (M, K)
    patches = x_nchw.reshape(B, C, Hp, P, Wp, P)
    patches = jnp.transpose(patches, (0, 2, 4, 1, 3, 5))
    patches = patches.reshape(M, K).astype(compute_dtype)

    # weight: (E, C, P, P) -> (K, E), same (c, ph, pw) ordering of K.
    w2d = weight.reshape(E, K).T.astype(compute_dtype)
    b2d = bias.reshape(1, E).astype(jnp.float32)

    # Optional K lane-alignment: only when the extra patch DMA is <= 12.5%.
    Kp = _round_up(K, 128)
    if Kp != K and (Kp - K) * 8 <= K:
        patches = jnp.pad(patches, ((0, 0), (0, Kp - K)))
        w2d = jnp.pad(w2d, ((0, Kp - K), (0, 0)))
        K = Kp

    # --- Tiling: 1D grid over M, weight/bias fully resident -----------------
    # Balanced TM: as close to 512 as possible while minimising tail padding.
    num_m_tiles = pl.cdiv(M, 512)
    TM = _round_up(pl.cdiv(M, num_m_tiles), 8)
    GM = pl.cdiv(M, TM)

    in_itemsize = jnp.dtype(compute_dtype).itemsize
    out_itemsize = jnp.dtype(out_dtype).itemsize

    # Honest byte count: patches streamed once, weight/bias fetched once,
    # output written once.
    cost = pl.CostEstimate(
        flops=2 * M * K * E,
        transcendentals=0,
        bytes_accessed=(M * K * in_itemsize
                        + K * E * in_itemsize
                        + E * 4
                        + M * E * out_itemsize),
    )

    # VMEM: assume double-buffering of every block (conservative); raise the
    # scoped limit only when a big resident weight (e.g. K=3072, E=1536)
    # would blow the 32 MiB default (v7x).
    vmem_needed = (2 * TM * K * in_itemsize      # patches tiles
                   + 2 * K * E * in_itemsize     # resident weight
                   + 2 * E * 4                   # resident bias
                   + 2 * TM * E * out_itemsize)  # output tiles
    cp_kwargs = dict(dimension_semantics=("parallel",))
    if vmem_needed > 30 * 1024 * 1024:
        cp_kwargs["vmem_limit_bytes"] = int(min(vmem_needed * 1.2,
                                                100 * 1024 * 1024))

    out = pl.pallas_call(
        _patch_embed_kernel,
        out_shape=jax.ShapeDtypeStruct((M, E), out_dtype),
        grid_spec=pltpu.PrefetchScalarGridSpec(
            num_scalar_prefetch=0,
            grid=(GM,),
            in_specs=[
                pl.BlockSpec((TM, K), lambda i: (i, 0)),  # patches (streamed)
                pl.BlockSpec((K, E), lambda i: (0, 0)),   # weight (resident)
                pl.BlockSpec((1, E), lambda i: (0, 0)),   # bias   (resident)
            ],
            out_specs=pl.BlockSpec((TM, E), lambda i: (i, 0)),
        ),
        compiler_params=pltpu.CompilerParams(**cp_kwargs),
        cost_estimate=cost,
    )(patches, w2d, b2d)

    out = out.reshape(B, Hp, Wp, E)
    if channels_last:
        return out
    # NCHW to match PyTorch Conv2d output (one XLA transpose pass).
    out = jnp.transpose(out, (0, 3, 1, 2))
    # self.norm is nn.Identity() (norm_layer=None) -> no-op
    return out


if __name__ == "__main__":
    # Small shapes consistent with the module's forward.
    B, C, H, W = 2, 4, 16, 16
    P = 4            # patch_size
    E = 32           # embed_dim

    key = jax.random.PRNGKey(0)
    kx, kw, kb = jax.random.split(key, 3)

    x = jax.random.normal(kx, (B, C, H, W), dtype=jnp.float32)
    # Deterministic synthetic parameters (Conv2d weight (E, C, P, P), bias (E,))
    weight = jax.random.normal(kw, (E, C, P, P), dtype=jnp.float32) * 0.02
    bias = jax.random.normal(kb, (E,), dtype=jnp.float32) * 0.02

    fwd = jax.jit(patch_embed_forward, static_argnums=(3,))
    out = fwd(x, weight, bias, P)
    out = jax.block_until_ready(out)
    assert out.shape == (B, E, H // P, W // P), out.shape

    # Reference 1: same bf16-operand / f32-accumulate numerics as the kernel.
    ref_bf16 = jax.lax.conv_general_dilated(
        x.astype(jnp.bfloat16), weight.astype(jnp.bfloat16),
        window_strides=(P, P), padding="VALID",
        dimension_numbers=("NCHW", "OIHW", "NCHW"),
        preferred_element_type=jnp.float32,
    ) + bias.reshape(1, E, 1, 1)
    assert jnp.allclose(out, ref_bf16, atol=1e-3, rtol=1e-3), float(
        jnp.max(jnp.abs(out - ref_bf16)))

    # Reference 2: full-f32 PyTorch-equivalent conv (loose tol: bf16 operands).
    ref_f32 = jax.lax.conv_general_dilated(
        x, weight, window_strides=(P, P), padding="VALID",
        dimension_numbers=("NCHW", "OIHW", "NCHW"),
    ) + bias.reshape(1, E, 1, 1)
    assert jnp.allclose(out, ref_f32, atol=5e-2, rtol=5e-2), float(
        jnp.max(jnp.abs(out - ref_f32)))

    print("KERNEL_OK")
</pallas_src>

<mosaic_0001>
module attributes {stable_mosaic.version = 11 : i64} {
  func.func @_patch_embed_kernel(%arg0: i32, %arg1: memref<32x64xbf16, #tpu.memory_space<vmem>>, %arg2: memref<64x32xbf16, #tpu.memory_space<vmem>>, %arg3: memref<1x32xf32, #tpu.memory_space<vmem>>, %arg4: memref<32x32xf32, #tpu.memory_space<vmem>>) attributes {dimension_semantics = [#tpu.dimension_semantics<parallel>], iteration_bounds = array<i64: 1>, scalar_prefetch = 0 : i64, scratch_operands = 0 : i64, tpu.core_type = #tpu.core_type<tc>, window_params = [{transform_indices = @transform_0, window_bounds = array<i64: 32, 64>}, {pipeline_mode = #tpu.pipeline_mode<synchronous>, transform_indices = @transform_1, window_bounds = array<i64: 64, 32>}, {pipeline_mode = #tpu.pipeline_mode<synchronous>, transform_indices = @transform_2, window_bounds = array<i64: 1, 32>}, {transform_indices = @transform_3, window_bounds = array<i64: 32, 32>}]} {
    %c0 = arith.constant 0 : index
    %c0_0 = arith.constant 0 : index
    %0 = vector.load %arg1[%c0, %c0_0] : memref<32x64xbf16, #tpu.memory_space<vmem>>, vector<32x64xbf16>
    %c0_1 = arith.constant 0 : index
    %c0_2 = arith.constant 0 : index
    %1 = vector.load %arg2[%c0_1, %c0_2] : memref<64x32xbf16, #tpu.memory_space<vmem>>, vector<64x32xbf16>
    %cst = arith.constant dense<0.000000e+00> : vector<32x32xf32>
    %2 = tpu.matmul %0, %1, %cst {dimension_numbers = #tpu.dot_dimension_numbers<[1], [0], [0], [1], [0, 0, 1, 1], [], []>} : vector<32x64xbf16>, vector<64x32xbf16>, vector<32x32xf32> -> vector<32x32xf32>
    %c0_3 = arith.constant 0 : index
    %c0_4 = arith.constant 0 : index
    %3 = vector.load %arg3[%c0_3, %c0_4] : memref<1x32xf32, #tpu.memory_space<vmem>>, vector<1x32xf32>
    %4 = vector.broadcast %3 : vector<1x32xf32> to vector<32x32xf32>
    %5 = arith.addf %2, %4 : vector<32x32xf32>
    %c0_5 = arith.constant 0 : index
    %c0_6 = arith.constant 0 : index
    %6 = vector.load %arg4[%c0_5, %c0_6] : memref<32x32xf32, #tpu.memory_space<vmem>>, vector<32x32xf32>
    tpu.vector_store %arg4[%c0_5, %c0_6], %5 {strides = array<i32>} : memref<32x32xf32, #tpu.memory_space<vmem>>, vector<32x32xf32>,
    return
  }
  func.func @transform_0(%arg0: i32) -> (i32, i32) {
    %c0_i32 = arith.constant 0 : i32
    %c0_i32_0 = arith.constant 0 : i32
    return %arg0, %c0_i32 : i32, i32
  }
  func.func @transform_1(%arg0: i32) -> (i32, i32) {
    %c0_i32 = arith.constant 0 : i32
    %c0_i32_0 = arith.constant 0 : i32
    %c0_i32_1 = arith.constant 0 : i32
    return %c0_i32, %c0_i32_0 : i32, i32
  }
  func.func @transform_2(%arg0: i32) -> (i32, i32) {
    %c0_i32 = arith.constant 0 : i32
    %c0_i32_0 = arith.constant 0 : i32
    %c0_i32_1 = arith.constant 0 : i32
    return %c0_i32, %c0_i32_0 : i32, i32
  }
  func.func @transform_3(%arg0: i32) -> (i32, i32) {
    %c0_i32 = arith.constant 0 : i32
    %c0_i32_0 = arith.constant 0 : i32
    return %arg0, %c0_i32 : i32, i32
  }
}

</mosaic_0001>

<bundles_post_ra>
// kernel: patch_embed_forward.1
= control target key start
LH: loop header
LB: loop body
LE: loop exit
PB: predicated region body
PF: predicated region fallthrough
CT: control target
= control target key end

     0   :  { %vm69_vm0 = vcmask 523264   ;;  %s262_s0 = inlined_call_operand.vmem [shape: bf16[32,64], index: 0, kind: input, shape index: {}]   ;;  %s263_s1 = inlined_call_operand.vmem [shape: bf16[64,32], index: 1, kind: input, shape index: {}]   ;;  %s264_s2 = inlined_call_operand.vmem [shape: f32[1,32], index: 2, kind: input, shape index: {}]   ;;  %s265_s3 = inlined_call_operand.hbm [shape: f32[32,32], index: 3, kind: output, shape index: {}]  }
   0x1   :  { %v176_v0 = vld [vmem:[%s263_s1] sm:$0xff]   ;;  %v177_v1 = vld [vmem:[%s263_s1 + $0x8] sm:$0xff]   ;;  %v178_v2 = vld [vmem:[%s263_s1 + $0x10] sm:$0xff]  }
   0x2   :  { %161 = vmatprep.subr.bf16.mxu0 %v176_v0  ;;  %v180_v3 = vld [vmem:[%s262_s0] sm:$0xff]  }
   0x3   :  { %162 = vmatpush3.bf16.msra.mxu0 %v176_v0  ;;  %169 = vmatprep.mubr.msk.bf16.mxu0 %vm69_vm0, %v180_v3 }
   0x4   :  { %163 = vmatprep.subr.bf16.mxu0 %v177_v1 }
   0x5   :  { %8 = vsyncpa [#allocation3], 0  ;;  %v179_v4 = vld [vmem:[%s263_s1 + $0x18] sm:$0xff]   ;;  %v181_v5 = vld [vmem:[%s262_s0 + $0x8] sm:$0xff]   ;;  %vm125_vm1 = vcmask 261120   ;;  %s206_s26 = smov [#allocation2]  }
   0x6   :  { %v146_v6 = vld [vmem:[%s264_s2] ss:$0 sm:$0xff]  ;;  %s135_s27 = sshll.u32 %s206_s26, 4  ;;  %s136_s27 = int_to_ptr.vmem [resolvable:$true] %s135_s27 }
   0x7   :  { %164 = vmatpush3.bf16.msra.mxu0 %v177_v1  ;;  %s182_s0 = scalar_lea.vmem %s136_s27, 512  ;;  %p187_p1 = scmp.lt.s32.totalorder %s136_s27, %s136_s27 }
   0x8   :  { %165 = vmatprep.subr.bf16.mxu0 %v178_v2  ;;  %p183_p0 = scmp.ne.s32.totalorder %s136_s27, %s182_s0  ;;  %p188_p2 = scmp.lt.s32.totalorder %s182_s0, %s182_s0 }
   0xa   :  { %p189_p3 = por %p188_p2, %p187_p1 }
   0xb   :  { %166 = vmatpush3.bf16.msra.mxu0 %v178_v2 }
   0xc   :  { %167 = vmatprep.subr.bf16.mxu0 %v179_v4  ;;  %p190_p4 = pnand %p189_p3, %p183_p0 }
   0xf   :  { %168 = vmatpush3.bf16.msra.mxu0 %v179_v4 }
  0x12   :  { %170 = vmatmul.mubr.msk.bf16.vlgmr.msra.gmra.mrb[0].mxu0 %vm69_vm0, %v181_v5 }
  0xe5   :  { %v171_v7 = vpop.f32.mrb[0].mxu0 }
  0xe6   :  { %v119_v8 = vadd.f32 %v171_v7, %v146_v6  ;;  %v110_v9 = vpop.f32.mrb[1].mxu0 }
  0xe7   :  { %v111_v10 = vadd.f32 %v146_v6, %v110_v9  ;;  %v172_v11 = vpop.f32.mrb[2].mxu0 }
  0xe8   :  { %128 = vst.msk [vmem:[#allocation2 + $0x10] sm:$0xff] %vm125_vm1, %v119_v8  ;;  %v122_v12 = vadd.f32 %v172_v11, %v146_v6  ;;  %v113_v13 = vpop.f32.mrb[3].mxu0 }
  0xe9   :  { %126 = vst.msk [vmem:[#allocation2] sm:$0xff] %vm125_vm1, %v111_v10  ;;  %v114_v14 = vadd.f32 %v146_v6, %v113_v13 }
  0xea   :  { %129 = vst.msk [vmem:[#allocation2 + $0x18] sm:$0xff] %vm125_vm1, %v122_v12 }
  0xeb   :  { %127 = vst.msk [vmem:[#allocation2 + $0x8] sm:$0xff] %vm125_vm1, %v114_v14 }
  0xec   :  { %193 = shalt.err (!%p190_p4)
}
  0xed   :  { %s194_s28 = scalar_lea.hbm %s265_s3, 512 }
  0xee   :  { %p195_p5 = scmp.ne.s32.totalorder %s265_s3, %s194_s28  ;;  %p198_p6 = scmp.lt.u32.totalorder %s194_s28, %s265_s3 }
  0xf0   :  { %p200_p7 = pnand %p198_p6, %p195_p5 }
  0xf2   :  { %203 = shalt.err (!%p200_p7)
}
  0xf3   :  { %s207_s6 = smov 128   ;;  %s208_s7 = smov 8  }
  0xf4   :  { %141 = dma.vmem_to_hbm [thread:$0]  %s136_s27, 512, %s265_s3, [#allocation3], %s207_s6, %s207_s6, %s208_s7  }
  0xf5   :  { %204 = dma.done.wait [#allocation3], 512  }
  0xf6   :  { %205 = vsyncadd [#allocation3], 4294966784 }
  0xf7   :  { %145 = vsyncpa [#allocation3], 1 }

</bundles_post_ra>
